<compile_context>
chip_gen: v6e
topology: v6e:2x2x1
jax: 0.10.0
libtpu: 0.0.40
codegen_flags: <defaults>
</compile_context>

<pallas_src>
import functools

import jax
import jax.numpy as jnp
from jax import lax
from jax.experimental import pallas as pl
from jax.experimental.pallas import tpu as pltpu


_VMEM_BUDGET_BYTES = 40 * 1024 * 1024  # conservative: fits v7x's 64 MiB VMEM


# ----------------------------------------------------------------------------
# Pallas kernel: fused (in-VMEM im2col + conv matmul + bias + class softmax)
# ----------------------------------------------------------------------------
def _make_classifier_kernel(tap_offsets, n_cols):
    """Builds the per-image kernel.

    tap_offsets : static flat offsets d = i*W + j, one per conv tap (i, j).
    n_cols      : number of dense anchor columns actually computed (L <= Lp).
    """

    def kernel(x_ref, w_ref, b_ref, o_ref):
        # x_ref: (C, H*W)    f32  one image, spatial flattened onto lanes
        # w_ref: (T, NC, C)  f32  resident per-tap weight matrices
        # b_ref: (NC, 1)     f32  resident bias
        # o_ref: (NC, Lp)    out  lane-dense softmax slab (only [:, :L] written)
        nc = o_ref.shape[0]
        acc = jnp.zeros((nc, n_cols), jnp.float32)
        # In-VMEM im2col: each tap is a static lane-shifted slice of the image;
        # accumulate the (NC, C) x (C, L) tap matmuls on the MXU (f32 accum).
        for t, d in enumerate(tap_offsets):
            tap = x_ref[:, d:d + n_cols]                       # (C, L)
            acc = acc + jnp.dot(w_ref[t], tap,
                                preferred_element_type=jnp.float32)
        logits = acc + b_ref[...]                              # bias over lanes
        # Softmax2d == softmax over the class (sublane) axis, column-local.
        m = jnp.max(logits, axis=0, keepdims=True)
        e = jnp.exp(logits - m)
        s = jnp.sum(e, axis=0, keepdims=True)
        # EUP approx reciprocal: columns sum to 1 only to ~1e-3 (inference OK).
        probs = e * pl.reciprocal(s, approx=True)
        o_ref[:, :n_cols] = probs.astype(o_ref.dtype)

    return kernel


# ----------------------------------------------------------------------------
# Wrapper: free reshapes only (no patch matrix, no big transposes)
# ----------------------------------------------------------------------------
@functools.partial(jax.jit, static_argnames=("stride", "out_dtype"))
def classifier_block_forward(x_nchw, weight, bias, *, stride=1,
                             out_dtype=jnp.float32):
    """Equivalent of ClassifierBlock.forward (valid Conv2d + Softmax2d).

    x_nchw : (N, C, H, W) f32
    weight : (num_class, C, kh, kw)   -- PyTorch Conv2d layout
    bias   : (num_class,)
    out    : (N, num_class, Ho, Wo), softmax over the class dim
    """
    n, c, h, w = x_nchw.shape
    nc_out, c_in, kh, kw = weight.shape
    assert c == c_in, "channel mismatch"
    ho = (h - kh) // stride + 1
    wo = (w - kw) // stride + 1
    assert ho > 0 and wo > 0, "kernel larger than input"

    # Dense-anchor formulation: logits are computed for every pixel that can
    # anchor a window in rows 0 .. (Ho-1)*stride, then the valid (Ho, Wo) grid
    # is extracted.  Columns whose window wraps the right edge hold garbage
    # logits, but softmax is column-local, everything stays finite, and they
    # are sliced away below.
    n_rows = (ho - 1) * stride + 1                  # anchor rows computed
    lp = n_rows * w                                 # output slab width (free reshape later)
    l = (n_rows - 1) * w + (wo - 1) * stride + 1    # columns actually computed (<= lp)
    tap_offsets = tuple(i * w + j for i in range(kh) for j in range(kw))
    n_taps = kh * kw

    # Free row-major view of x; tiny weight reorder to per-tap (NC, C) mats.
    x_flat = x_nchw.reshape(n, c, h * w)
    w_taps = jnp.transpose(weight, (2, 3, 0, 1)).reshape(n_taps, nc_out, c)
    b2 = bias.reshape(nc_out, 1).astype(jnp.float32)

    # VMEM budget: double-buffered image + output blocks, resident weights,
    # generous allowance for in-kernel tap slices / softmax temporaries.
    out_bytes = jnp.dtype(out_dtype).itemsize
    x_blk = c * h * w * 4
    o_blk = nc_out * lp * out_bytes
    w_bytes = n_taps * nc_out * c * 4
    scratch_est = (c + 4 * nc_out) * lp * 4
    vmem_need = 2 * x_blk + 2 * o_blk + w_bytes + scratch_est
    if vmem_need > _VMEM_BUDGET_BYTES:
        # TODO(synk): tile the anchor-column (lane) axis with a halo'd slice of
        # the resident image row instead of failing for huge images.
        raise ValueError(f"per-image working set {vmem_need} B exceeds VMEM budget")
    vmem_limit = int(min(max(2 * vmem_need, 8 * 1024 * 1024), 64 * 1024 * 1024))

    probs = pl.pallas_call(
        _make_classifier_kernel(tap_offsets, l),
        out_shape=jax.ShapeDtypeStruct((n, nc_out, lp), out_dtype),
        grid_spec=pltpu.PrefetchScalarGridSpec(
            num_scalar_prefetch=0,
            grid=(n,),                                              # one image / step
            in_specs=[
                pl.BlockSpec((None, c, h * w), lambda i: (i, 0, 0)),       # image
                pl.BlockSpec((n_taps, nc_out, c), lambda i: (0, 0, 0)),    # resident W
                pl.BlockSpec((nc_out, 1), lambda i: (0, 0)),               # resident b
            ],
            out_specs=pl.BlockSpec((None, nc_out, lp), lambda i: (i, 0, 0)),
        ),
        compiler_params=pltpu.CompilerParams(
            dimension_semantics=("parallel",),      # batch axis across TCs (v7x)
            vmem_limit_bytes=vmem_limit),
    )(x_flat, w_taps, b2)

    # Free reshape, then strided extraction of the valid (Ho, Wo) anchors; this
    # also drops the wrapped-window / never-written tail columns.
    out = probs.reshape(n, nc_out, n_rows, w)
    out = out[:, :, ::stride, :(wo - 1) * stride + 1:stride]
    return out


# ----------------------------------------------------------------------------
# Main: deterministic params, small shapes, reference check
# ----------------------------------------------------------------------------
if __name__ == "__main__":
    params = dict(num_channels=4, num_class=4, kernel_c=3, stride_conv=1)

    key = jax.random.PRNGKey(0)
    kx, kw_, kb = jax.random.split(key, 3)

    N, C, H, W = 2, params["num_channels"], 16, 16
    NC, KC, ST = params["num_class"], params["kernel_c"], params["stride_conv"]

    x = jax.random.normal(kx, (N, C, H, W), dtype=jnp.float32)
    # Deterministic "Conv2d-like" init (uniform in +/- 1/sqrt(fan_in)).
    fan_in = C * KC * KC
    bound = 1.0 / (fan_in ** 0.5)
    weight = jax.random.uniform(kw_, (NC, C, KC, KC), jnp.float32, -bound, bound)
    bias = jax.random.uniform(kb, (NC,), jnp.float32, -bound, bound)

    out = classifier_block_forward(x, weight, bias, stride=ST)
    out = jax.block_until_ready(out)

    # Reference: plain-JAX conv + channel softmax (PyTorch Softmax2d semantics).
    conv_ref = lax.conv_general_dilated(
        x, weight, window_strides=(ST, ST), padding="VALID",
        dimension_numbers=("NCHW", "OIHW", "NCHW")) + bias[None, :, None, None]
    ref = jax.nn.softmax(conv_ref, axis=1)

    Ho, Wo = (H - KC) // ST + 1, (W - KC) // ST + 1
    assert out.shape == (N, NC, Ho, Wo)
    assert bool(jnp.all(jnp.isfinite(out))), "non-finite values in kept outputs"
    # f32 compute end-to-end; tolerance loosened only for the EUP approximate
    # reciprocal in the softmax denominator.
    assert jnp.allclose(out, ref, atol=1e-2, rtol=1e-2), "mismatch vs reference"

    print("KERNEL_OK")
</pallas_src>

<mosaic_0001>
module attributes {stable_mosaic.version = 11 : i64} {
  func.func @kernel(%arg0: i32, %arg1: memref<1x4x256xf32, #tpu.memory_space<vmem>>, %arg2: memref<9x4x4xf32, #tpu.memory_space<vmem>>, %arg3: memref<4x1xf32, #tpu.memory_space<vmem>>, %arg4: memref<1x4x224xf32, #tpu.memory_space<vmem>>) attributes {dimension_semantics = [#tpu.dimension_semantics<parallel>], iteration_bounds = array<i64: 2>, scalar_prefetch = 0 : i64, scratch_operands = 0 : i64, tpu.core_type = #tpu.core_type<tc>, window_params = [{transform_indices = @transform_0, window_bounds = array<i64: 1, 4, 256>}, {pipeline_mode = #tpu.pipeline_mode<synchronous>, transform_indices = @transform_1, window_bounds = array<i64: 9, 4, 4>}, {pipeline_mode = #tpu.pipeline_mode<synchronous>, transform_indices = @transform_2, window_bounds = array<i64: 4, 1>}, {transform_indices = @transform_3, window_bounds = array<i64: 1, 4, 224>}]} {
    %cst = arith.constant 0.000000e+00 : f32
    %0 = vector.broadcast %cst : f32 to vector<4x222xf32>
    %c0 = arith.constant 0 : index
    %c0_0 = arith.constant 0 : index
    %c0_1 = arith.constant 0 : index
    %1 = vector.load %arg1[%c0, %c0_0, %c0_1] : memref<1x4x256xf32, #tpu.memory_space<vmem>>, vector<1x4x222xf32>
    %2 = vector.shape_cast %1 : vector<1x4x222xf32> to vector<4x222xf32>
    %c0_2 = arith.constant 0 : index
    %c0_3 = arith.constant 0 : index
    %c0_4 = arith.constant 0 : index
    %3 = vector.load %arg2[%c0_2, %c0_3, %c0_4] : memref<9x4x4xf32, #tpu.memory_space<vmem>>, vector<1x4x4xf32>
    %4 = vector.shape_cast %3 : vector<1x4x4xf32> to vector<4x4xf32>
    %cst_5 = arith.constant dense<0.000000e+00> : vector<4x222xf32>
    %5 = tpu.matmul %4, %2, %cst_5 {dimension_numbers = #tpu.dot_dimension_numbers<[1], [0], [0], [1], [0, 0, 1, 1], [], []>} : vector<4x4xf32>, vector<4x222xf32>, vector<4x222xf32> -> vector<4x222xf32>
    %6 = arith.addf %0, %5 : vector<4x222xf32>
    %c0_6 = arith.constant 0 : index
    %c0_7 = arith.constant 0 : index
    %c1 = arith.constant 1 : index
    %7 = vector.load %arg1[%c0_6, %c0_7, %c1] : memref<1x4x256xf32, #tpu.memory_space<vmem>>, vector<1x4x222xf32>
    %8 = vector.shape_cast %7 : vector<1x4x222xf32> to vector<4x222xf32>
    %c1_8 = arith.constant 1 : index
    %c0_9 = arith.constant 0 : index
    %c0_10 = arith.constant 0 : index
    %9 = vector.load %arg2[%c1_8, %c0_9, %c0_10] : memref<9x4x4xf32, #tpu.memory_space<vmem>>, vector<1x4x4xf32>
    %10 = vector.shape_cast %9 : vector<1x4x4xf32> to vector<4x4xf32>
    %cst_11 = arith.constant dense<0.000000e+00> : vector<4x222xf32>
    %11 = tpu.matmul %10, %8, %cst_11 {dimension_numbers = #tpu.dot_dimension_numbers<[1], [0], [0], [1], [0, 0, 1, 1], [], []>} : vector<4x4xf32>, vector<4x222xf32>, vector<4x222xf32> -> vector<4x222xf32>
    %12 = arith.addf %6, %11 : vector<4x222xf32>
    %c0_12 = arith.constant 0 : index
    %c0_13 = arith.constant 0 : index
    %c2 = arith.constant 2 : index
    %13 = vector.load %arg1[%c0_12, %c0_13, %c2] : memref<1x4x256xf32, #tpu.memory_space<vmem>>, vector<1x4x222xf32>
    %14 = vector.shape_cast %13 : vector<1x4x222xf32> to vector<4x222xf32>
    %c2_14 = arith.constant 2 : index
    %c0_15 = arith.constant 0 : index
    %c0_16 = arith.constant 0 : index
    %15 = vector.load %arg2[%c2_14, %c0_15, %c0_16] : memref<9x4x4xf32, #tpu.memory_space<vmem>>, vector<1x4x4xf32>
    %16 = vector.shape_cast %15 : vector<1x4x4xf32> to vector<4x4xf32>
    %cst_17 = arith.constant dense<0.000000e+00> : vector<4x222xf32>
    %17 = tpu.matmul %16, %14, %cst_17 {dimension_numbers = #tpu.dot_dimension_numbers<[1], [0], [0], [1], [0, 0, 1, 1], [], []>} : vector<4x4xf32>, vector<4x222xf32>, vector<4x222xf32> -> vector<4x222xf32>
    %18 = arith.addf %12, %17 : vector<4x222xf32>
    %c0_18 = arith.constant 0 : index
    %c0_19 = arith.constant 0 : index
    %c16 = arith.constant 16 : index
    %19 = vector.load %arg1[%c0_18, %c0_19, %c16] : memref<1x4x256xf32, #tpu.memory_space<vmem>>, vector<1x4x222xf32>
    %20 = vector.shape_cast %19 : vector<1x4x222xf32> to vector<4x222xf32>
    %c3 = arith.constant 3 : index
    %c0_20 = arith.constant 0 : index
    %c0_21 = arith.constant 0 : index
    %21 = vector.load %arg2[%c3, %c0_20, %c0_21] : memref<9x4x4xf32, #tpu.memory_space<vmem>>, vector<1x4x4xf32>
    %22 = vector.shape_cast %21 : vector<1x4x4xf32> to vector<4x4xf32>
    %cst_22 = arith.constant dense<0.000000e+00> : vector<4x222xf32>
    %23 = tpu.matmul %22, %20, %cst_22 {dimension_numbers = #tpu.dot_dimension_numbers<[1], [0], [0], [1], [0, 0, 1, 1], [], []>} : vector<4x4xf32>, vector<4x222xf32>, vector<4x222xf32> -> vector<4x222xf32>
    %24 = arith.addf %18, %23 : vector<4x222xf32>
    %c0_23 = arith.constant 0 : index
    %c0_24 = arith.constant 0 : index
    %c17 = arith.constant 17 : index
    %25 = vector.load %arg1[%c0_23, %c0_24, %c17] : memref<1x4x256xf32, #tpu.memory_space<vmem>>, vector<1x4x222xf32>
    %26 = vector.shape_cast %25 : vector<1x4x222xf32> to vector<4x222xf32>
    %c4 = arith.constant 4 : index
    %c0_25 = arith.constant 0 : index
    %c0_26 = arith.constant 0 : index
    %27 = vector.load %arg2[%c4, %c0_25, %c0_26] : memref<9x4x4xf32, #tpu.memory_space<vmem>>, vector<1x4x4xf32>
    %28 = vector.shape_cast %27 : vector<1x4x4xf32> to vector<4x4xf32>
    %cst_27 = arith.constant dense<0.000000e+00> : vector<4x222xf32>
    %29 = tpu.matmul %28, %26, %cst_27 {dimension_numbers = #tpu.dot_dimension_numbers<[1], [0], [0], [1], [0, 0, 1, 1], [], []>} : vector<4x4xf32>, vector<4x222xf32>, vector<4x222xf32> -> vector<4x222xf32>
    %30 = arith.addf %24, %29 : vector<4x222xf32>
    %c0_28 = arith.constant 0 : index
    %c0_29 = arith.constant 0 : index
    %c18 = arith.constant 18 : index
    %31 = vector.load %arg1[%c0_28, %c0_29, %c18] : memref<1x4x256xf32, #tpu.memory_space<vmem>>, vector<1x4x222xf32>
    %32 = vector.shape_cast %31 : vector<1x4x222xf32> to vector<4x222xf32>
    %c5 = arith.constant 5 : index
    %c0_30 = arith.constant 0 : index
    %c0_31 = arith.constant 0 : index
    %33 = vector.load %arg2[%c5, %c0_30, %c0_31] : memref<9x4x4xf32, #tpu.memory_space<vmem>>, vector<1x4x4xf32>
    %34 = vector.shape_cast %33 : vector<1x4x4xf32> to vector<4x4xf32>
    %cst_32 = arith.constant dense<0.000000e+00> : vector<4x222xf32>
    %35 = tpu.matmul %34, %32, %cst_32 {dimension_numbers = #tpu.dot_dimension_numbers<[1], [0], [0], [1], [0, 0, 1, 1], [], []>} : vector<4x4xf32>, vector<4x222xf32>, vector<4x222xf32> -> vector<4x222xf32>
    %36 = arith.addf %30, %35 : vector<4x222xf32>
    %c0_33 = arith.constant 0 : index
    %c0_34 = arith.constant 0 : index
    %c32 = arith.constant 32 : index
    %37 = vector.load %arg1[%c0_33, %c0_34, %c32] : memref<1x4x256xf32, #tpu.memory_space<vmem>>, vector<1x4x222xf32>
    %38 = vector.shape_cast %37 : vector<1x4x222xf32> to vector<4x222xf32>
    %c6 = arith.constant 6 : index
    %c0_35 = arith.constant 0 : index
    %c0_36 = arith.constant 0 : index
    %39 = vector.load %arg2[%c6, %c0_35, %c0_36] : memref<9x4x4xf32, #tpu.memory_space<vmem>>, vector<1x4x4xf32>
    %40 = vector.shape_cast %39 : vector<1x4x4xf32> to vector<4x4xf32>
    %cst_37 = arith.constant dense<0.000000e+00> : vector<4x222xf32>
    %41 = tpu.matmul %40, %38, %cst_37 {dimension_numbers = #tpu.dot_dimension_numbers<[1], [0], [0], [1], [0, 0, 1, 1], [], []>} : vector<4x4xf32>, vector<4x222xf32>, vector<4x222xf32> -> vector<4x222xf32>
    %42 = arith.addf %36, %41 : vector<4x222xf32>
    %c0_38 = arith.constant 0 : index
    %c0_39 = arith.constant 0 : index
    %c33 = arith.constant 33 : index
    %43 = vector.load %arg1[%c0_38, %c0_39, %c33] : memref<1x4x256xf32, #tpu.memory_space<vmem>>, vector<1x4x222xf32>
    %44 = vector.shape_cast %43 : vector<1x4x222xf32> to vector<4x222xf32>
    %c7 = arith.constant 7 : index
    %c0_40 = arith.constant 0 : index
    %c0_41 = arith.constant 0 : index
    %45 = vector.load %arg2[%c7, %c0_40, %c0_41] : memref<9x4x4xf32, #tpu.memory_space<vmem>>, vector<1x4x4xf32>
    %46 = vector.shape_cast %45 : vector<1x4x4xf32> to vector<4x4xf32>
    %cst_42 = arith.constant dense<0.000000e+00> : vector<4x222xf32>
    %47 = tpu.matmul %46, %44, %cst_42 {dimension_numbers = #tpu.dot_dimension_numbers<[1], [0], [0], [1], [0, 0, 1, 1], [], []>} : vector<4x4xf32>, vector<4x222xf32>, vector<4x222xf32> -> vector<4x222xf32>
    %48 = arith.addf %42, %47 : vector<4x222xf32>
    %c0_43 = arith.constant 0 : index
    %c0_44 = arith.constant 0 : index
    %c34 = arith.constant 34 : index
    %49 = vector.load %arg1[%c0_43, %c0_44, %c34] : memref<1x4x256xf32, #tpu.memory_space<vmem>>, vector<1x4x222xf32>
    %50 = vector.shape_cast %49 : vector<1x4x222xf32> to vector<4x222xf32>
    %c8 = arith.constant 8 : index
    %c0_45 = arith.constant 0 : index
    %c0_46 = arith.constant 0 : index
    %51 = vector.load %arg2[%c8, %c0_45, %c0_46] : memref<9x4x4xf32, #tpu.memory_space<vmem>>, vector<1x4x4xf32>
    %52 = vector.shape_cast %51 : vector<1x4x4xf32> to vector<4x4xf32>
    %cst_47 = arith.constant dense<0.000000e+00> : vector<4x222xf32>
    %53 = tpu.matmul %52, %50, %cst_47 {dimension_numbers = #tpu.dot_dimension_numbers<[1], [0], [0], [1], [0, 0, 1, 1], [], []>} : vector<4x4xf32>, vector<4x222xf32>, vector<4x222xf32> -> vector<4x222xf32>
    %54 = arith.addf %48, %53 : vector<4x222xf32>
    %c0_48 = arith.constant 0 : index
    %c0_49 = arith.constant 0 : index
    %55 = vector.load %arg3[%c0_48, %c0_49] : memref<4x1xf32, #tpu.memory_space<vmem>>, vector<4x1xf32>
    %56 = vector.broadcast %55 : vector<4x1xf32> to vector<4x222xf32>
    %57 = arith.addf %54, %56 : vector<4x222xf32>
    %cst_50 = arith.constant dense<0xFF800000> : vector<222xf32>
    %58 = vector.multi_reduction <maximumf>, %57, %cst_50 [0] : vector<4x222xf32> to vector<222xf32>
    %59 = vector.shape_cast %58 : vector<222xf32> to vector<1x222xf32>
    %60 = vector.broadcast %59 : vector<1x222xf32> to vector<4x222xf32>
    %61 = arith.subf %57, %60 : vector<4x222xf32>
    %62 = math.exp %61 : vector<4x222xf32>
    %cst_51 = arith.constant dense<0.000000e+00> : vector<222xf32>
    %63 = vector.multi_reduction <add>, %62, %cst_51 [0] : vector<4x222xf32> to vector<222xf32>
    %64 = vector.shape_cast %63 : vector<222xf32> to vector<1x222xf32>
    %65 = tpu.reciprocal %64 {approx = true} : vector<1x222xf32> -> vector<1x222xf32>
    %66 = vector.broadcast %65 : vector<1x222xf32> to vector<4x222xf32>
    %67 = arith.mulf %62, %66 : vector<4x222xf32>
    %c0_52 = arith.constant 0 : index
    %c0_53 = arith.constant 0 : index
    %c0_54 = arith.constant 0 : index
    %68 = vector.load %arg4[%c0_52, %c0_53, %c0_54] : memref<1x4x224xf32, #tpu.memory_space<vmem>>, vector<1x4x222xf32>
    %69 = vector.shape_cast %68 : vector<1x4x222xf32> to vector<4x222xf32>
    %70 = vector.shape_cast %67 : vector<4x222xf32> to vector<1x4x222xf32>
    tpu.vector_store %arg4[%c0_52, %c0_53, %c0_54], %70 {strides = array<i32>} : memref<1x4x224xf32, #tpu.memory_space<vmem>>, vector<1x4x222xf32>,
    return
  }
  func.func @transform_0(%arg0: i32) -> (i32, i32, i32) {
    %c0_i32 = arith.constant 0 : i32
    %c0_i32_0 = arith.constant 0 : i32
    %c0_i32_1 = arith.constant 0 : i32
    return %arg0, %c0_i32, %c0_i32_0 : i32, i32, i32
  }
  func.func @transform_1(%arg0: i32) -> (i32, i32, i32) {
    %c0_i32 = arith.constant 0 : i32
    %c0_i32_0 = arith.constant 0 : i32
    %c0_i32_1 = arith.constant 0 : i32
    %c0_i32_2 = arith.constant 0 : i32
    return %c0_i32, %c0_i32_0, %c0_i32_1 : i32, i32, i32
  }
  func.func @transform_2(%arg0: i32) -> (i32, i32) {
    %c0_i32 = arith.constant 0 : i32
    %c0_i32_0 = arith.constant 0 : i32
    %c0_i32_1 = arith.constant 0 : i32
    return %c0_i32, %c0_i32_0 : i32, i32
  }
  func.func @transform_3(%arg0: i32) -> (i32, i32, i32) {
    %c0_i32 = arith.constant 0 : i32
    %c0_i32_0 = arith.constant 0 : i32
    %c0_i32_1 = arith.constant 0 : i32
    return %arg0, %c0_i32, %c0_i32_0 : i32, i32, i32
  }
}

</mosaic_0001>

<bundles_post_ra>
// kernel: classifier_block_forward.1
= control target key start
LH: loop header
LB: loop body
LE: loop exit
PB: predicated region body
PF: predicated region fallthrough
CT: control target
= control target key end

     0   :  { %s1201_s12 = smov 0   ;;  %s1296_s0 = inlined_call_operand.vmem [shape: f32[2,4,256], index: 0, kind: input, shape index: {}]   ;;  %s1297_s1 = inlined_call_operand.vmem [shape: f32[9,4,4], index: 1, kind: input, shape index: {}]   ;;  %s1298_s2 = inlined_call_operand.vmem [shape: f32[4,1], index: 2, kind: input, shape index: {}]   ;;  %s1299_s3 = inlined_call_operand.vmem [shape: f32[2,4,224], index: 3, kind: output, shape index: {}]  }
   0x1 LB: > { %s1087_s13 = sadd.s32 4294967295, %s1169_s12   ;;  %p1091_p0 = scmp.ge.s32.totalorder %s1169_s12, 1  ;;  %s1169_s12 = sphi %s1201_s12, %s13_s12  }
   0x2   : > { %p137_p1 = scmp.lt.s32.totalorder %s1169_s12, 3 }
   0x4   : > { %p138_p2 = pnand %p1091_p0, %p137_p1 }
   0x5   : > { %p161_p3 = scmp.lt.s32.totalorder (!%p138_p2), %s1087_s13, 1  ;;  %s1172_s18 = smov (!%p138_p2), 126  }
   0x6   : > { %141 = sbr.rel (%p138_p2) target bundleno = 422 (0x1a6), region = 32  ;;  %s1173_s19 = smov (!%p138_p2), 127  }
   0x7   : > { %s1174_s22 = smov (!%p138_p2), 112   ;;  %s1175_s23 = smov (!%p138_p2), 111  }
   0x8   : > { %s1176_s24 = smov (!%p138_p2), 110   ;;  %s1178_s25 = smov (!%p138_p2), 96  }
   0x9   : > { %s1179_s26 = smov (!%p138_p2), 95   ;;  %s1180_s27 = smov (!%p138_p2), 94  }
   0xb   : > { %s1301_s13 = smov (!%p161_p3, %s1087_s13), 1  ;;  %v1171_v0 = vmov 0.0   ;;  %vm187_vm0 = vcmask 1043456   ;;  %v172_v3 = vld [vmem:[%s1297_s1] sm:$0xf]  ;;  %vm183_vm1 = vcmask 31744  }
   0xc   : > { %334 = vmatprep.mubr.f32.mxu1 %v1171_v0  ;;  %256 = vmatprep.mubr.f32.mxu0 %v1171_v0  ;;  %s1133_s14 = sshll.u32 %s1301_s13, 3  ;;  %v1177_v4 = vmov 0   ;;  %v978_v5 = vld [vmem:[%s1298_s2] sm:$0xf]  ;;  %vm441_vm2 = vcmask 916480   ;;  %vm181_vm3 = vcmask 1039360  }
   0xd   : > { %s165_s17 = scalar_lea.vmem %s1296_s0, %s1133_s14  ;;  %1153 = vset.pattern.permute.xlu0 %v1177_v4  ;;  %vm350_vm4 = vcmask 1031168   ;;  %v1096_v12 = vld [vmem:[%s1297_s1 + $0x4] sm:$0xf]  ;;  %vm532_vm5 = vcmask 908288   ;;  %v1107_v15 = vld [vmem:[%s1297_s1 + $0xc] sm:$0xf] }
   0xe   : > { %v341_v1 = vld [vmem:[%s165_s17] sm:$0xff]  ;;  %v1103_v19 = vld [vmem:[%s1297_s1 + $0x8] sm:$0xf]  ;;  %vm623_vm6 = vcmask 900096   ;;  %v1111_v23 = vld [vmem:[%s1297_s1 + $0x10] sm:$0xf] }
   0xf   : > { %346 = vrot.lane.b32.xlu1 %v341_v1, %s1172_s18  ;;  %v345_v2 = vcombine.high %v341_v1, %v341_v1  ;;  %177 = vrot.lane.b32.xlu0 %v341_v1, %s1173_s19  ;;  %v1115_v24 = vld [vmem:[%s1297_s1 + $0x14] sm:$0xf]  ;;  %vm714_vm7 = vcmask 785408   ;;  %v1119_v28 = vld [vmem:[%s1297_s1 + $0x18] sm:$0xf]  ;;  %vm805_vm8 = vcmask 777216  }
  0x10   : > { %v1123_v32 = vld [vmem:[%s1297_s1 + $0x1c] sm:$0xf]  ;;  %vm896_vm9 = vcmask 769024   ;;  %v1127_v36 = vld [vmem:[%s1297_s1 + $0x20] sm:$0xf]  ;;  %vm993_vm10 = vcmask 764928  }
  0x11   : > { %1100 = vmatprep.subr.msk.mxu1 %vm187_vm0, %v345_v2  ;;  %vm1029_vm11 = vcmask 769028  }
  0x12   : > { %1101 = vmatpush1.msk.msra.mxu1 %vm187_vm0, %v341_v1  ;;  %vm1030_vm12 = vmor %vm1029_vm11, %vm187_vm0 }
  0x13   : > { %348 = vrot.lane.b32.xlu1 %v345_v2, %s1172_s18  ;;  %437 = vrot.lane.b32.xlu0 %v341_v1, %s1174_s22 }
  0x14   : > { %1102 = vmatmul.mubr.msk.f32.vlgmr.msra.gmra.mxu1 %vm183_vm1, %v172_v3 }
  0x15   : > { %514 = vmatprep.mubr.f32.mxu1 %v1171_v0 }
  0x17   : > { %439 = vrot.lane.b32.xlu1 %v345_v2, %s1174_s22  ;;  %179 = vrot.lane.b32.xlu0 %v345_v2, %s1173_s19 }
  0x1b   : > { %530 = vrot.lane.b32.xlu1 %v345_v2, %s1175_s23  ;;  %528 = vrot.lane.b32.xlu0 %v341_v1, %s1175_s23 }
  0x1f   : > { %621 = vrot.lane.b32.xlu1 %v345_v2, %s1176_s24  ;;  %619 = vrot.lane.b32.xlu0 %v341_v1, %s1176_s24  ;;  %s170_s24 = scalar_lea.vmem %s1299_s3, %s1133_s14 }
  0x23   : > { %712 = vrot.lane.b32.xlu1 %v345_v2, %s1178_s25  ;;  %710 = vrot.lane.b32.xlu0 %v341_v1, %s1178_s25 }
  0x27   : > { %803 = vrot.lane.b32.xlu1 %v345_v2, %s1179_s26  ;;  %801 = vrot.lane.b32.xlu0 %v341_v1, %s1179_s26 }
  0x2b   : > { %894 = vrot.lane.b32.xlu1 %v345_v2, %s1180_s27  ;;  %892 = vrot.lane.b32.xlu0 %v341_v1, %s1180_s27 }
  0x2f   : > { %981 = vperm.xlu0 %1153, %v978_v5  }
  0x81   : > { %v347_v6 = vpop.permute.xlu1 %346  ;;  %v178_v7 = vpop.permute.xlu0 %177 }
  0x85   : > { %v349_v8 = vpop.permute.xlu1 %348  ;;  %v438_v9 = vpop.permute.xlu0 %437 }
  0x86   : > { %v351_v16 = vsel %vm350_vm4, %v347_v6, %v349_v8 }
  0x89   : > { %v440_v10 = vpop.permute.xlu1 %439  ;;  %v180_v11 = vpop.permute.xlu0 %179 }
  0x8a   : > { %v442_v13 = vsel %vm441_vm2, %v438_v9, %v440_v10  ;;  %1097 = vmatprep.subr.msk.mxu0 %vm187_vm0, %v180_v11  ;;  %1108 = vmatprep.subr.msk.mxu1 %vm187_vm0, %v440_v10  ;;  %v182_v14 = vsel %vm181_vm3, %v178_v7, %v180_v11 }
  0x8b   : > { %1098 = vmatpush1.msk.msra.mxu0 %vm187_vm0, %v182_v14  ;;  %1109 = vmatpush1.msk.msra.mxu1 %vm187_vm0, %v442_v13 }
  0x8c   : > { %1099 = vmatmul.mubr.msk.f32.vlgmr.msra.gmra.mxu0 %vm183_vm1, %v1096_v12  ;;  %1104 = vmatprep.subr.msk.mxu0 %vm187_vm0, %v349_v8 }
  0x8d   : > { %v531_v17 = vpop.permute.xlu1 %530  ;;  %1105 = vmatpush1.msk.msra.mxu0 %vm187_vm0, %v351_v16  ;;  %v529_v18 = vpop.permute.xlu0 %528  ;;  %423 = vmatprep.mubr.f32.mxu0 %v1171_v0 }
  0x8e   : > { %v533_v20 = vsel %vm532_vm5, %v529_v18, %v531_v17  ;;  %1112 = vmatprep.subr.msk.mxu0 %vm187_vm0, %v531_v17  ;;  %1110 = vmatmul.mubr.msk.f32.vlgmr.msra.gmra.mxu1 %vm183_vm1, %v1107_v15 }
  0x8f   : > { %696 = vmatprep.mubr.f32.mxu1 %v1171_v0 }
  0x90   : > { %1106 = vmatmul.mubr.msk.f32.vlgmr.msra.gmra.mxu0 %vm183_vm1, %v1103_v19 }
  0x91   : > { %1113 = vmatpush1.msk.msra.mxu0 %vm187_vm0, %v533_v20  ;;  %v622_v21 = vpop.permute.xlu1 %621  ;;  %v620_v22 = vpop.permute.xlu0 %619  ;;  %605 = vmatprep.mubr.f32.mxu0 %v1171_v0 }
  0x92   : > { %v624_v25 = vsel %vm623_vm6, %v620_v22, %v622_v21  ;;  %1116 = vmatprep.subr.msk.mxu1 %vm187_vm0, %v622_v21 }
  0x93   : > { %1117 = vmatpush1.msk.msra.mxu1 %vm187_vm0, %v624_v25 }
  0x94   : > { %1114 = vmatmul.mubr.msk.f32.vlgmr.msra.gmra.mxu0 %vm183_vm1, %v1111_v23  ;;  %1118 = vmatmul.mubr.msk.f32.vlgmr.msra.gmra.mxu1 %vm183_vm1, %v1115_v24 }
  0x95   : > { %v713_v26 = vpop.permute.xlu1 %712  ;;  %v711_v27 = vpop.permute.xlu0 %710  ;;  %787 = vmatprep.mubr.f32.mxu0 %v1171_v0  ;;  %878 = vmatprep.mubr.f32.mxu1 %v1171_v0 }
  0x96   : > { %v715_v29 = vsel %vm714_vm7, %v711_v27, %v713_v26  ;;  %1120 = vmatprep.subr.msk.mxu0 %vm187_vm0, %v713_v26 }
  0x97   : > { %1121 = vmatpush1.msk.msra.mxu0 %vm187_vm0, %v715_v29 }
  0x98   : > { %1122 = vmatmul.mubr.msk.f32.vlgmr.msra.gmra.mxu0 %vm183_vm1, %v1119_v28 }
  0x99   : > { %v804_v30 = vpop.permute.xlu1 %803  ;;  %v802_v31 = vpop.permute.xlu0 %801  ;;  %969 = vmatprep.mubr.f32.mxu0 %v1171_v0 }
  0x9a   : > { %v806_v33 = vsel %vm805_vm8, %v802_v31, %v804_v30  ;;  %1124 = vmatprep.subr.msk.mxu1 %vm187_vm0, %v804_v30 }
  0x9b   : > { %1125 = vmatpush1.msk.msra.mxu1 %vm187_vm0, %v806_v33 }
  0x9c   : > { %1126 = vmatmul.mubr.msk.f32.vlgmr.msra.gmra.mxu1 %vm183_vm1, %v1123_v32 }
  0x9d   : > { %v895_v34 = vpop.permute.xlu1 %894  ;;  %v893_v35 = vpop.permute.xlu0 %892 }
  0x9e   : > { %v897_v37 = vsel %vm896_vm9, %v893_v35, %v895_v34  ;;  %1128 = vmatprep.subr.msk.mxu0 %vm187_vm0, %v895_v34 }
  0x9f   : > { %1129 = vmatpush1.msk.msra.mxu0 %vm187_vm0, %v897_v37 }
  0xa0   : > { %1130 = vmatmul.mubr.msk.f32.vlgmr.msra.gmra.mxu0 %vm183_vm1, %v1127_v36 }
  0xaa   : > { %v982_v4 = vpop.permute.xlu0 %981 }
  0xd4   : > { %v336_v38 = vpop.f32.mrf.mxu1 }
  0xd6   : > { %v338_v39 = vpop.f32.mrf.mxu1 }
 0x14c   : > { %v258_v40 = vpop.f32.mrf.mxu0 }
 0x14d   : > { %v337_v41 = vadd.f32 %v336_v38, %v258_v40 }
 0x14e   : > { %v260_v42 = vpop.f32.mrf.mxu0  ;;  %v516_v43 = vpop.f32.mrf.mxu1 }
 0x14f   : > { %v339_v44 = vadd.f32 %v338_v39, %v260_v42 }
 0x150   : > { %v425_v45 = vpop.f32.mrf.mxu0  ;;  %v518_v46 = vpop.f32.mrf.mxu1 }
 0x151   : > { %v430_v47 = vadd.f32 %v425_v45, %v337_v41 }
 0x152   : > { %v427_v48 = vpop.f32.mrf.mxu0 }
 0x153   : > { %v431_v49 = vadd.f32 %v427_v48, %v339_v44  ;;  %v521_v50 = vadd.f32 %v516_v43, %v430_v47 }
 0x154   : > { %v607_v51 = vpop.f32.mrf.mxu0  ;;  %v698_v52 = vpop.f32.mrf.mxu1 }
 0x155   : > { %v522_v53 = vadd.f32 %v518_v46, %v431_v49  ;;  %v612_v54 = vadd.f32 %v607_v51, %v521_v50 }
 0x156   : > { %v609_v55 = vpop.f32.mrf.mxu0  ;;  %v700_v58 = vpop.f32.mrf.mxu1 }
 0x157   : > { %v613_v56 = vadd.f32 %v609_v55, %v522_v53  ;;  %v703_v57 = vadd.f32 %v698_v52, %v612_v54 }
 0x158   : > { %v789_v59 = vpop.f32.mrf.mxu0 }
 0x159   : > { %v704_v60 = vadd.f32 %v700_v58, %v613_v56  ;;  %v794_v61 = vadd.f32 %v789_v59, %v703_v57 }
 0x15a   : > { %v791_v62 = vpop.f32.mrf.mxu0 }
 0x15b   : > { %v795_v1 = vadd.f32 %v791_v62, %v704_v60 }
 0x15c   : > { %v880_v63 = vpop.f32.mrf.mxu1 }
 0x15d   : > { %v885_v2 = vadd.f32 %v880_v63, %v794_v61 }
 0x15e   : > { %v882_v0 = vpop.f32.mrf.mxu1 }
 0x15f   : > { %v886_v5 = vadd.f32 %v882_v0, %v795_v1 }
 0x160   : > { %v971_v3 = vpop.f32.mrf.mxu0 }
 0x161   : > { %v976_v6 = vadd.f32 %v971_v3, %v885_v2 }
 0x162   : > { %v973_v7 = vpop.f32.mrf.mxu0 }
 0x163   : > { %v977_v8 = vadd.f32 %v973_v7, %v886_v5  ;;  %v984_v9 = vadd.f32 %v982_v4, %v976_v6 }
 0x165   : > { %v985_v10 = vadd.f32 %v982_v4, %v977_v8  ;;  %v986_v11 = vsel %vm187_vm0, %v984_v9, -inf }
 0x166   : > { %v987_v12 = vrot.slane %v986_v11, 4 }
 0x167   : > { %v994_v13 = vsel %vm993_vm10, %v985_v10, -inf }
 0x168   : > { %v988_v14 = vmax.f32 %v986_v11, %v987_v12  ;;  %v995_v15 = vrot.slane %v994_v13, 4 }
 0x16a   : > { %v989_v16 = vrot.slane %v988_v14, 2  ;;  %v996_v17 = vmax.f32 %v994_v13, %v995_v15 }
 0x16c   : > { %v990_v18 = vmax.f32 %v988_v14, %v989_v16  ;;  %v997_v19 = vrot.slane %v996_v17, 2 }
 0x16e   : > { %v991_v20 = vrot.slane %v990_v18, 1  ;;  %v998_v21 = vmax.f32 %v996_v17, %v997_v19 }
 0x170   : > { %v992_v22 = vmax.f32 %v990_v18, %v991_v20  ;;  %v999_v23 = vrot.slane %v998_v21, 1 }
 0x172   : > { %v1000_v24 = vmax.f32 %v998_v21, %v999_v23  ;;  %v1001_v25 = vsub.f32 %v984_v9, %v992_v22 }
 0x174   : > { %v1002_v26 = vsub.f32 %v985_v10, %v1000_v24  ;;  %v1003_v27 = vmul.f32 1.442695, %v1001_v25 }
 0x176   : > { %1155 = vpow2.f32 %v1003_v27  ;;  %v1005_v28 = vmul.f32 1.442695, %v1002_v26 }
 0x178   : > { %1157 = vpow2.f32 %v1005_v28 }
 0x183   : > { %v1156_v29 = vpop.eup %1155 }
 0x184   : > { %v1007_v30 = vsel %vm187_vm0, %v1156_v29, 0.0 }
 0x185   : > { %v1158_v31 = vpop.eup %1157  ;;  %v1008_v32 = vrot.slane %v1007_v30, 4 }
 0x186   : > { %v1014_v33 = vsel %vm993_vm10, %v1158_v31, 0.0 }
 0x187   : > { %v1009_v34 = vadd.f32 %v1008_v32, %v1007_v30  ;;  %v1015_v35 = vrot.slane %v1014_v33, 4 }
 0x189   : > { %v1010_v36 = vrot.slane %v1009_v34, 2  ;;  %v1016_v37 = vadd.f32 %v1015_v35, %v1014_v33 }
 0x18b   : > { %v1011_v38 = vadd.f32 %v1010_v36, %v1009_v34  ;;  %v1017_v39 = vrot.slane %v1016_v37, 2 }
 0x18d   : > { %v1012_v40 = vrot.slane %v1011_v38, 1  ;;  %v1018_v41 = vadd.f32 %v1017_v39, %v1016_v37 }
 0x18f   : > { %v1013_v42 = vadd.f32 %v1012_v40, %v1011_v38  ;;  %v1019_v43 = vrot.slane %v1018_v41, 1 }
 0x191   : > { %v1020_v44 = vadd.f32 %v1019_v43, %v1018_v41  ;;  %1159 = vrcp.f32 %v1013_v42 }
 0x193   : > { %1161 = vrcp.f32 %v1020_v44 }
 0x19e   : > { %v1160_v45 = vpop.eup %1159 }
 0x19f   : > { %v1023_v47 = vmul.f32 %v1160_v45, %v1156_v29 }
 0x1a0   : > { %v1162_v46 = vpop.eup %1161 }
 0x1a1   : > { %v1024_v48 = vmul.f32 %v1162_v46, %v1158_v31 }
 0x1a3   : > { %v1027_v49 = vcombine.low %v1023_v47, %v1024_v48 }
 0x1a5   : > { %1031 = vst.msk [vmem:[%s170_s24] sm:$0xff] %vm1030_vm12, %v1027_v49 }
 0x1a6 PF: > { %s13_s12 = sadd.s32 1, %s1169_s12  }
 0x1a7   : > { %p10_p4 = scmp.ge.s32.totalorder %s13_s12, 4  }
 0x1a9   :  { %12 = sbr.rel (!%p10_p4) target bundleno = 1 (0x1), region = 70 }

</bundles_post_ra>
